<compile_context>
chip_gen: v7x
topology: tpu7x:2x2x1
jax: 0.10.0
libtpu: 0.0.40
codegen_flags: <defaults>
</compile_context>

<pallas_src>
import jax
import jax.numpy as jnp
import numpy as np
from jax import lax
from jax.experimental import pallas as pl
from jax.experimental.pallas import tpu as pltpu


def make_mha_kernel(batch_block, n_seq, embed_dim, n_head, q_dim, v_dim,
                    compute_dtype=jnp.float32, approx_recip=False):
    """Build a Pallas kernel that processes `batch_block` batches per grid step."""
    rows = batch_block * n_seq

    def mha_kernel(x_ref, wq_ref, bq_ref, wk_ref, bk_ref, wv_ref, bv_ref,
                   wo_ref, bo_ref, o_ref):
        # (Bblk, S, E) -> (Bblk*S, E): fold batch into rows so the fused
        # projections are tall, lane-dense MXU matmuls.
        x2 = x_ref[...].reshape(rows, embed_dim)

        # Fused full-width projections: one matmul per projection covering ALL
        # heads, bias added once (hoisted out of the head loop).
        q_all = (jnp.dot(x2, wq_ref[...], preferred_element_type=jnp.float32)
                 + bq_ref[...])
        k_all = (jnp.dot(x2, wk_ref[...], preferred_element_type=jnp.float32)
                 + bk_ref[...])
        v_all = (jnp.dot(x2, wv_ref[...], preferred_element_type=jnp.float32)
                 + bv_ref[...])

        # Back to (Bblk, S, H*d) and optional bf16 cast for the MXU-facing
        # score / PV matmuls (f32 accumulation is kept below).
        q_all = q_all.reshape(batch_block, n_seq, n_head * q_dim).astype(compute_dtype)
        k_all = k_all.reshape(batch_block, n_seq, n_head * q_dim).astype(compute_dtype)
        v_all = v_all.reshape(batch_block, n_seq, n_head * v_dim).astype(compute_dtype)

        head_outs = []
        for h in range(n_head):                     # static, unrolled (small H)
            q = q_all[:, :, h * q_dim:(h + 1) * q_dim]
            k = k_all[:, :, h * q_dim:(h + 1) * q_dim]
            v = v_all[:, :, h * v_dim:(h + 1) * v_dim]

            # Scores (Bblk, S, S): contract last dims directly, batched over
            # the folded batch axis -- no explicit transpose of K.
            s = lax.dot_general(
                q, k,
                dimension_numbers=(((2,), (2,)), ((0,), (0,))),
                preferred_element_type=jnp.float32)

            # Numerically-stable softmax; divide replaced by EUP reciprocal.
            m = jnp.max(s, axis=-1, keepdims=True)
            p = jnp.exp(s - m)
            denom = jnp.sum(p, axis=-1, keepdims=True)
            attn = p * pl.reciprocal(denom, approx=approx_recip)

            # (Bblk, S, S) @ (Bblk, S, dv) -> (Bblk, S, dv), f32 accumulate.
            oh = lax.dot_general(
                attn.astype(compute_dtype), v,
                dimension_numbers=(((2,), (1,)), ((0,), (0,))),
                preferred_element_type=jnp.float32)
            head_outs.append(oh)

        # Concatenate heads and do ONE full-width output projection
        # (mathematically identical to per-head folded accumulation).
        o_cat = jnp.concatenate(head_outs, axis=-1).reshape(rows, n_head * v_dim)
        out = (jnp.dot(o_cat, wo_ref[...], preferred_element_type=jnp.float32)
               + bo_ref[...])
        o_ref[...] = out.reshape(batch_block, n_seq, embed_dim).astype(o_ref.dtype)

    return mha_kernel


def multi_head_self_attention(x, params, n_head, q_dim, v_dim, *,
                              batch_block=None,
                              compute_dtype=jnp.float32,
                              approx_recip=False):
    """x: (B, S, E) float32. params: dict of (in,out)-layout weights & biases."""
    n_batch, n_seq, embed_dim = x.shape
    wq, bq = params["wq"], params["bq"]
    wk, bk = params["wk"], params["bk"]
    wv, bv = params["wv"], params["bv"]
    wo, bo = params["wo"], params["bo"]

    if batch_block is None:
        # Largest divisor of n_batch whose folded row block stays modest; at
        # tiny sizes this collapses the grid to one step (per-step overhead
        # dominates otherwise), at large sizes it leaves >=2 parallel steps
        # so v7x's second TensorCore gets work.
        max_rows = 1024
        batch_block = 1
        for cand in range(1, n_batch + 1):
            if n_batch % cand == 0 and cand * n_seq <= max_rows:
                batch_block = cand
    assert n_batch % batch_block == 0
    grid = (n_batch // batch_block,)

    kernel = make_mha_kernel(batch_block, n_seq, embed_dim, n_head, q_dim,
                             v_dim, compute_dtype=compute_dtype,
                             approx_recip=approx_recip)

    # Biases are passed as (1, N) so they live as 2-D VMEM tiles and are added
    # once after the fused projections.
    bq2 = bq.reshape(1, -1)
    bk2 = bk.reshape(1, -1)
    bv2 = bv.reshape(1, -1)
    bo2 = bo.reshape(1, -1)

    full = lambda arr: pl.BlockSpec(arr.shape, lambda b: (0,) * arr.ndim)

    return pl.pallas_call(
        kernel,
        out_shape=jax.ShapeDtypeStruct((n_batch, n_seq, embed_dim), jnp.float32),
        grid_spec=pltpu.PrefetchScalarGridSpec(
            num_scalar_prefetch=0,
            grid=grid,
            in_specs=[
                pl.BlockSpec((batch_block, n_seq, embed_dim),
                             lambda b: (b, 0, 0)),                      # x
                full(wq), full(bq2),
                full(wk), full(bk2),
                full(wv), full(bv2),
                full(wo), full(bo2),
            ],
            out_specs=pl.BlockSpec((batch_block, n_seq, embed_dim),
                                   lambda b: (b, 0, 0)),
        ),
        compiler_params=pltpu.CompilerParams(
            dimension_semantics=("parallel",),
            vmem_limit_bytes=32 * 1024 * 1024),
    )(x, wq, bq2, wk, bk2, wv, bv2, wo, bo2)


def reference_mha(x, params, n_head, q_dim, v_dim):
    """Pure-JAX reference mirroring the PyTorch forward."""
    n_batch, n_seq, embed_dim = x.shape
    Q = x @ params["wq"] + params["bq"]
    K = x @ params["wk"] + params["bk"]
    V = x @ params["wv"] + params["bv"]
    Q = Q.reshape(n_batch, n_seq, n_head, q_dim).transpose(0, 2, 1, 3)
    K = K.reshape(n_batch, n_seq, n_head, q_dim).transpose(0, 2, 1, 3)
    V = V.reshape(n_batch, n_seq, n_head, v_dim).transpose(0, 2, 1, 3)
    scores = jnp.einsum("bhqd,bhkd->bhqk", Q, K)
    attn = jax.nn.softmax(scores, axis=-1)
    out = jnp.einsum("bhqk,bhkd->bhqd", attn, V)
    out = out.transpose(0, 2, 1, 3).reshape(n_batch, n_seq, n_head * v_dim)
    return out @ params["wo"] + params["bo"]


if __name__ == "__main__":
    # Small shapes consistent with the module: embed_dim divisible by n_head.
    n_batch, n_seq, embed_dim = 2, 8, 32
    n_head, q_dim, v_dim = 4, 16, 16

    key = jax.random.PRNGKey(0)
    keys = jax.random.split(key, 9)

    def init(k, shape, scale=0.05):
        return (scale * jax.random.normal(k, shape)).astype(jnp.float32)

    params = {
        "wq": init(keys[0], (embed_dim, n_head * q_dim)),
        "bq": init(keys[1], (n_head * q_dim,)),
        "wk": init(keys[2], (embed_dim, n_head * q_dim)),
        "bk": init(keys[3], (n_head * q_dim,)),
        "wv": init(keys[4], (embed_dim, n_head * v_dim)),
        "bv": init(keys[5], (n_head * v_dim,)),
        "wo": init(keys[6], (n_head * v_dim, embed_dim)),
        "bo": init(keys[7], (embed_dim,)),
    }

    x = jax.random.normal(keys[8], (n_batch, n_seq, embed_dim), dtype=jnp.float32)

    ref = reference_mha(x, params, n_head, q_dim, v_dim)

    # Precise path (f32 matmul operands, exact reciprocal).
    out = multi_head_self_attention(x, params, n_head, q_dim, v_dim)
    out = jax.block_until_ready(out)
    np.testing.assert_allclose(np.asarray(out), np.asarray(ref),
                               rtol=1e-5, atol=1e-5)

    # Fast path recommended for v6e/v7x: bf16 score/PV matmul operands with
    # f32 accumulation + approximate (EUP) reciprocal in the softmax.
    out_fast = multi_head_self_attention(
        x, params, n_head, q_dim, v_dim,
        compute_dtype=jnp.bfloat16, approx_recip=True)
    out_fast = jax.block_until_ready(out_fast)
    np.testing.assert_allclose(np.asarray(out_fast), np.asarray(ref),
                               rtol=5e-2, atol=1e-2)

    print("KERNEL_OK")
</pallas_src>

<mosaic_0001>
module attributes {stable_mosaic.version = 11 : i64} {
  func.func @mha_kernel(%arg0: i32, %arg1: memref<2x8x32xf32, #tpu.memory_space<vmem>>, %arg2: memref<32x64xf32, #tpu.memory_space<vmem>>, %arg3: memref<1x64xf32, #tpu.memory_space<vmem>>, %arg4: memref<32x64xf32, #tpu.memory_space<vmem>>, %arg5: memref<1x64xf32, #tpu.memory_space<vmem>>, %arg6: memref<32x64xf32, #tpu.memory_space<vmem>>, %arg7: memref<1x64xf32, #tpu.memory_space<vmem>>, %arg8: memref<64x32xf32, #tpu.memory_space<vmem>>, %arg9: memref<1x32xf32, #tpu.memory_space<vmem>>, %arg10: memref<2x8x32xf32, #tpu.memory_space<vmem>>) attributes {dimension_semantics = [#tpu.dimension_semantics<parallel>], iteration_bounds = array<i64: 1>, scalar_prefetch = 0 : i64, scratch_operands = 0 : i64, tpu.core_type = #tpu.core_type<tc>, window_params = [{transform_indices = @transform_0, window_bounds = array<i64: 2, 8, 32>}, {pipeline_mode = #tpu.pipeline_mode<synchronous>, transform_indices = @transform_1, window_bounds = array<i64: 32, 64>}, {pipeline_mode = #tpu.pipeline_mode<synchronous>, transform_indices = @transform_2, window_bounds = array<i64: 1, 64>}, {pipeline_mode = #tpu.pipeline_mode<synchronous>, transform_indices = @transform_3, window_bounds = array<i64: 32, 64>}, {pipeline_mode = #tpu.pipeline_mode<synchronous>, transform_indices = @transform_4, window_bounds = array<i64: 1, 64>}, {pipeline_mode = #tpu.pipeline_mode<synchronous>, transform_indices = @transform_5, window_bounds = array<i64: 32, 64>}, {pipeline_mode = #tpu.pipeline_mode<synchronous>, transform_indices = @transform_6, window_bounds = array<i64: 1, 64>}, {pipeline_mode = #tpu.pipeline_mode<synchronous>, transform_indices = @transform_7, window_bounds = array<i64: 64, 32>}, {pipeline_mode = #tpu.pipeline_mode<synchronous>, transform_indices = @transform_8, window_bounds = array<i64: 1, 32>}, {transform_indices = @transform_9, window_bounds = array<i64: 2, 8, 32>}]} {
    %c0 = arith.constant 0 : index
    %c0_0 = arith.constant 0 : index
    %c0_1 = arith.constant 0 : index
    %0 = vector.load %arg1[%c0, %c0_0, %c0_1] : memref<2x8x32xf32, #tpu.memory_space<vmem>>, vector<2x8x32xf32>
    %1 = vector.shape_cast %0 : vector<2x8x32xf32> to vector<16x32xf32>
    %c0_2 = arith.constant 0 : index
    %c0_3 = arith.constant 0 : index
    %2 = vector.load %arg2[%c0_2, %c0_3] : memref<32x64xf32, #tpu.memory_space<vmem>>, vector<32x64xf32>
    %cst = arith.constant dense<0.000000e+00> : vector<16x64xf32>
    %3 = tpu.matmul %1, %2, %cst {dimension_numbers = #tpu.dot_dimension_numbers<[1], [0], [0], [1], [0, 0, 1, 1], [], []>} : vector<16x32xf32>, vector<32x64xf32>, vector<16x64xf32> -> vector<16x64xf32>
    %c0_4 = arith.constant 0 : index
    %c0_5 = arith.constant 0 : index
    %4 = vector.load %arg3[%c0_4, %c0_5] : memref<1x64xf32, #tpu.memory_space<vmem>>, vector<1x64xf32>
    %5 = vector.broadcast %4 : vector<1x64xf32> to vector<16x64xf32>
    %6 = arith.addf %3, %5 : vector<16x64xf32>
    %c0_6 = arith.constant 0 : index
    %c0_7 = arith.constant 0 : index
    %7 = vector.load %arg4[%c0_6, %c0_7] : memref<32x64xf32, #tpu.memory_space<vmem>>, vector<32x64xf32>
    %cst_8 = arith.constant dense<0.000000e+00> : vector<16x64xf32>
    %8 = tpu.matmul %1, %7, %cst_8 {dimension_numbers = #tpu.dot_dimension_numbers<[1], [0], [0], [1], [0, 0, 1, 1], [], []>} : vector<16x32xf32>, vector<32x64xf32>, vector<16x64xf32> -> vector<16x64xf32>
    %c0_9 = arith.constant 0 : index
    %c0_10 = arith.constant 0 : index
    %9 = vector.load %arg5[%c0_9, %c0_10] : memref<1x64xf32, #tpu.memory_space<vmem>>, vector<1x64xf32>
    %10 = vector.broadcast %9 : vector<1x64xf32> to vector<16x64xf32>
    %11 = arith.addf %8, %10 : vector<16x64xf32>
    %c0_11 = arith.constant 0 : index
    %c0_12 = arith.constant 0 : index
    %12 = vector.load %arg6[%c0_11, %c0_12] : memref<32x64xf32, #tpu.memory_space<vmem>>, vector<32x64xf32>
    %cst_13 = arith.constant dense<0.000000e+00> : vector<16x64xf32>
    %13 = tpu.matmul %1, %12, %cst_13 {dimension_numbers = #tpu.dot_dimension_numbers<[1], [0], [0], [1], [0, 0, 1, 1], [], []>} : vector<16x32xf32>, vector<32x64xf32>, vector<16x64xf32> -> vector<16x64xf32>
    %c0_14 = arith.constant 0 : index
    %c0_15 = arith.constant 0 : index
    %14 = vector.load %arg7[%c0_14, %c0_15] : memref<1x64xf32, #tpu.memory_space<vmem>>, vector<1x64xf32>
    %15 = vector.broadcast %14 : vector<1x64xf32> to vector<16x64xf32>
    %16 = arith.addf %13, %15 : vector<16x64xf32>
    %17 = vector.shape_cast %6 : vector<16x64xf32> to vector<2x8x64xf32>
    %18 = vector.shape_cast %11 : vector<16x64xf32> to vector<2x8x64xf32>
    %19 = vector.shape_cast %16 : vector<16x64xf32> to vector<2x8x64xf32>
    %20 = vector.extract_strided_slice %17 {offsets = [0, 0, 0], sizes = [2, 8, 16], strides = [1, 1, 1]} : vector<2x8x64xf32> to vector<2x8x16xf32>
    %21 = vector.extract_strided_slice %18 {offsets = [0, 0, 0], sizes = [2, 8, 16], strides = [1, 1, 1]} : vector<2x8x64xf32> to vector<2x8x16xf32>
    %22 = vector.extract_strided_slice %19 {offsets = [0, 0, 0], sizes = [2, 8, 16], strides = [1, 1, 1]} : vector<2x8x64xf32> to vector<2x8x16xf32>
    %cst_16 = arith.constant dense<0.000000e+00> : vector<2x8x8xf32>
    %23 = tpu.matmul %20, %21, %cst_16 {dimension_numbers = #tpu.dot_dimension_numbers<[2], [2], [1], [1], [0, 0, 0, 1, 1, 1], [0], [0]>} : vector<2x8x16xf32>, vector<2x8x16xf32>, vector<2x8x8xf32> -> vector<2x8x8xf32>
    %cst_17 = arith.constant dense<0xFF800000> : vector<2x8xf32>
    %24 = vector.multi_reduction <maximumf>, %23, %cst_17 [2] : vector<2x8x8xf32> to vector<2x8xf32>
    %25 = vector.shape_cast %24 : vector<2x8xf32> to vector<2x8x1xf32>
    %26 = vector.broadcast %25 : vector<2x8x1xf32> to vector<2x8x8xf32>
    %27 = arith.subf %23, %26 : vector<2x8x8xf32>
    %28 = math.exp %27 : vector<2x8x8xf32>
    %cst_18 = arith.constant dense<0.000000e+00> : vector<2x8xf32>
    %29 = vector.multi_reduction <add>, %28, %cst_18 [2] : vector<2x8x8xf32> to vector<2x8xf32>
    %30 = vector.shape_cast %29 : vector<2x8xf32> to vector<2x8x1xf32>
    %31 = tpu.reciprocal %30 : vector<2x8x1xf32> -> vector<2x8x1xf32>
    %32 = vector.broadcast %31 : vector<2x8x1xf32> to vector<2x8x8xf32>
    %33 = arith.mulf %28, %32 : vector<2x8x8xf32>
    %cst_19 = arith.constant dense<0.000000e+00> : vector<2x8x16xf32>
    %34 = tpu.matmul %33, %22, %cst_19 {dimension_numbers = #tpu.dot_dimension_numbers<[2], [1], [1], [2], [0, 0, 0, 1, 1, 2], [0], [0]>} : vector<2x8x8xf32>, vector<2x8x16xf32>, vector<2x8x16xf32> -> vector<2x8x16xf32>
    %35 = vector.extract_strided_slice %17 {offsets = [0, 0, 16], sizes = [2, 8, 16], strides = [1, 1, 1]} : vector<2x8x64xf32> to vector<2x8x16xf32>
    %36 = vector.extract_strided_slice %18 {offsets = [0, 0, 16], sizes = [2, 8, 16], strides = [1, 1, 1]} : vector<2x8x64xf32> to vector<2x8x16xf32>
    %37 = vector.extract_strided_slice %19 {offsets = [0, 0, 16], sizes = [2, 8, 16], strides = [1, 1, 1]} : vector<2x8x64xf32> to vector<2x8x16xf32>
    %cst_20 = arith.constant dense<0.000000e+00> : vector<2x8x8xf32>
    %38 = tpu.matmul %35, %36, %cst_20 {dimension_numbers = #tpu.dot_dimension_numbers<[2], [2], [1], [1], [0, 0, 0, 1, 1, 1], [0], [0]>} : vector<2x8x16xf32>, vector<2x8x16xf32>, vector<2x8x8xf32> -> vector<2x8x8xf32>
    %cst_21 = arith.constant dense<0xFF800000> : vector<2x8xf32>
    %39 = vector.multi_reduction <maximumf>, %38, %cst_21 [2] : vector<2x8x8xf32> to vector<2x8xf32>
    %40 = vector.shape_cast %39 : vector<2x8xf32> to vector<2x8x1xf32>
    %41 = vector.broadcast %40 : vector<2x8x1xf32> to vector<2x8x8xf32>
    %42 = arith.subf %38, %41 : vector<2x8x8xf32>
    %43 = math.exp %42 : vector<2x8x8xf32>
    %cst_22 = arith.constant dense<0.000000e+00> : vector<2x8xf32>
    %44 = vector.multi_reduction <add>, %43, %cst_22 [2] : vector<2x8x8xf32> to vector<2x8xf32>
    %45 = vector.shape_cast %44 : vector<2x8xf32> to vector<2x8x1xf32>
    %46 = tpu.reciprocal %45 : vector<2x8x1xf32> -> vector<2x8x1xf32>
    %47 = vector.broadcast %46 : vector<2x8x1xf32> to vector<2x8x8xf32>
    %48 = arith.mulf %43, %47 : vector<2x8x8xf32>
    %cst_23 = arith.constant dense<0.000000e+00> : vector<2x8x16xf32>
    %49 = tpu.matmul %48, %37, %cst_23 {dimension_numbers = #tpu.dot_dimension_numbers<[2], [1], [1], [2], [0, 0, 0, 1, 1, 2], [0], [0]>} : vector<2x8x8xf32>, vector<2x8x16xf32>, vector<2x8x16xf32> -> vector<2x8x16xf32>
    %50 = vector.extract_strided_slice %17 {offsets = [0, 0, 32], sizes = [2, 8, 16], strides = [1, 1, 1]} : vector<2x8x64xf32> to vector<2x8x16xf32>
    %51 = vector.extract_strided_slice %18 {offsets = [0, 0, 32], sizes = [2, 8, 16], strides = [1, 1, 1]} : vector<2x8x64xf32> to vector<2x8x16xf32>
    %52 = vector.extract_strided_slice %19 {offsets = [0, 0, 32], sizes = [2, 8, 16], strides = [1, 1, 1]} : vector<2x8x64xf32> to vector<2x8x16xf32>
    %cst_24 = arith.constant dense<0.000000e+00> : vector<2x8x8xf32>
    %53 = tpu.matmul %50, %51, %cst_24 {dimension_numbers = #tpu.dot_dimension_numbers<[2], [2], [1], [1], [0, 0, 0, 1, 1, 1], [0], [0]>} : vector<2x8x16xf32>, vector<2x8x16xf32>, vector<2x8x8xf32> -> vector<2x8x8xf32>
    %cst_25 = arith.constant dense<0xFF800000> : vector<2x8xf32>
    %54 = vector.multi_reduction <maximumf>, %53, %cst_25 [2] : vector<2x8x8xf32> to vector<2x8xf32>
    %55 = vector.shape_cast %54 : vector<2x8xf32> to vector<2x8x1xf32>
    %56 = vector.broadcast %55 : vector<2x8x1xf32> to vector<2x8x8xf32>
    %57 = arith.subf %53, %56 : vector<2x8x8xf32>
    %58 = math.exp %57 : vector<2x8x8xf32>
    %cst_26 = arith.constant dense<0.000000e+00> : vector<2x8xf32>
    %59 = vector.multi_reduction <add>, %58, %cst_26 [2] : vector<2x8x8xf32> to vector<2x8xf32>
    %60 = vector.shape_cast %59 : vector<2x8xf32> to vector<2x8x1xf32>
    %61 = tpu.reciprocal %60 : vector<2x8x1xf32> -> vector<2x8x1xf32>
    %62 = vector.broadcast %61 : vector<2x8x1xf32> to vector<2x8x8xf32>
    %63 = arith.mulf %58, %62 : vector<2x8x8xf32>
    %cst_27 = arith.constant dense<0.000000e+00> : vector<2x8x16xf32>
    %64 = tpu.matmul %63, %52, %cst_27 {dimension_numbers = #tpu.dot_dimension_numbers<[2], [1], [1], [2], [0, 0, 0, 1, 1, 2], [0], [0]>} : vector<2x8x8xf32>, vector<2x8x16xf32>, vector<2x8x16xf32> -> vector<2x8x16xf32>
    %65 = vector.extract_strided_slice %17 {offsets = [0, 0, 48], sizes = [2, 8, 16], strides = [1, 1, 1]} : vector<2x8x64xf32> to vector<2x8x16xf32>
    %66 = vector.extract_strided_slice %18 {offsets = [0, 0, 48], sizes = [2, 8, 16], strides = [1, 1, 1]} : vector<2x8x64xf32> to vector<2x8x16xf32>
    %67 = vector.extract_strided_slice %19 {offsets = [0, 0, 48], sizes = [2, 8, 16], strides = [1, 1, 1]} : vector<2x8x64xf32> to vector<2x8x16xf32>
    %cst_28 = arith.constant dense<0.000000e+00> : vector<2x8x8xf32>
    %68 = tpu.matmul %65, %66, %cst_28 {dimension_numbers = #tpu.dot_dimension_numbers<[2], [2], [1], [1], [0, 0, 0, 1, 1, 1], [0], [0]>} : vector<2x8x16xf32>, vector<2x8x16xf32>, vector<2x8x8xf32> -> vector<2x8x8xf32>
    %cst_29 = arith.constant dense<0xFF800000> : vector<2x8xf32>
    %69 = vector.multi_reduction <maximumf>, %68, %cst_29 [2] : vector<2x8x8xf32> to vector<2x8xf32>
    %70 = vector.shape_cast %69 : vector<2x8xf32> to vector<2x8x1xf32>
    %71 = vector.broadcast %70 : vector<2x8x1xf32> to vector<2x8x8xf32>
    %72 = arith.subf %68, %71 : vector<2x8x8xf32>
    %73 = math.exp %72 : vector<2x8x8xf32>
    %cst_30 = arith.constant dense<0.000000e+00> : vector<2x8xf32>
    %74 = vector.multi_reduction <add>, %73, %cst_30 [2] : vector<2x8x8xf32> to vector<2x8xf32>
    %75 = vector.shape_cast %74 : vector<2x8xf32> to vector<2x8x1xf32>
    %76 = tpu.reciprocal %75 : vector<2x8x1xf32> -> vector<2x8x1xf32>
    %77 = vector.broadcast %76 : vector<2x8x1xf32> to vector<2x8x8xf32>
    %78 = arith.mulf %73, %77 : vector<2x8x8xf32>
    %cst_31 = arith.constant dense<0.000000e+00> : vector<2x8x16xf32>
    %79 = tpu.matmul %78, %67, %cst_31 {dimension_numbers = #tpu.dot_dimension_numbers<[2], [1], [1], [2], [0, 0, 0, 1, 1, 2], [0], [0]>} : vector<2x8x8xf32>, vector<2x8x16xf32>, vector<2x8x16xf32> -> vector<2x8x16xf32>
    %80 = tpu.concatenate %34, %49, %64, %79 in 2 : vector<2x8x16xf32>, vector<2x8x16xf32>, vector<2x8x16xf32>, vector<2x8x16xf32> -> vector<2x8x64xf32>
    %81 = vector.shape_cast %80 : vector<2x8x64xf32> to vector<16x64xf32>
    %c0_32 = arith.constant 0 : index
    %c0_33 = arith.constant 0 : index
    %82 = vector.load %arg8[%c0_32, %c0_33] : memref<64x32xf32, #tpu.memory_space<vmem>>, vector<64x32xf32>
    %cst_34 = arith.constant dense<0.000000e+00> : vector<16x32xf32>
    %83 = tpu.matmul %81, %82, %cst_34 {dimension_numbers = #tpu.dot_dimension_numbers<[1], [0], [0], [1], [0, 0, 1, 1], [], []>} : vector<16x64xf32>, vector<64x32xf32>, vector<16x32xf32> -> vector<16x32xf32>
    %c0_35 = arith.constant 0 : index
    %c0_36 = arith.constant 0 : index
    %84 = vector.load %arg9[%c0_35, %c0_36] : memref<1x32xf32, #tpu.memory_space<vmem>>, vector<1x32xf32>
    %85 = vector.broadcast %84 : vector<1x32xf32> to vector<16x32xf32>
    %86 = arith.addf %83, %85 : vector<16x32xf32>
    %87 = vector.shape_cast %86 : vector<16x32xf32> to vector<2x8x32xf32>
    %c0_37 = arith.constant 0 : index
    %c0_38 = arith.constant 0 : index
    %c0_39 = arith.constant 0 : index
    %88 = vector.load %arg10[%c0_37, %c0_38, %c0_39] : memref<2x8x32xf32, #tpu.memory_space<vmem>>, vector<2x8x32xf32>
    tpu.vector_store %arg10[%c0_37, %c0_38, %c0_39], %87 {strides = array<i32>} : memref<2x8x32xf32, #tpu.memory_space<vmem>>, vector<2x8x32xf32>,
    return
  }
  func.func @transform_0(%arg0: i32) -> (i32, i32, i32) {
    %c0_i32 = arith.constant 0 : i32
    %c0_i32_0 = arith.constant 0 : i32
    %c0_i32_1 = arith.constant 0 : i32
    return %arg0, %c0_i32, %c0_i32_0 : i32, i32, i32
  }
  func.func @transform_1(%arg0: i32) -> (i32, i32) {
    %c0_i32 = arith.constant 0 : i32
    %c0_i32_0 = arith.constant 0 : i32
    %c0_i32_1 = arith.constant 0 : i32
    return %c0_i32, %c0_i32_0 : i32, i32
  }
  func.func @transform_2(%arg0: i32) -> (i32, i32) {
    %c0_i32 = arith.constant 0 : i32
    %c0_i32_0 = arith.constant 0 : i32
    %c0_i32_1 = arith.constant 0 : i32
    return %c0_i32, %c0_i32_0 : i32, i32
  }
  func.func @transform_3(%arg0: i32) -> (i32, i32) {
    %c0_i32 = arith.constant 0 : i32
    %c0_i32_0 = arith.constant 0 : i32
    %c0_i32_1 = arith.constant 0 : i32
    return %c0_i32, %c0_i32_0 : i32, i32
  }
  func.func @transform_4(%arg0: i32) -> (i32, i32) {
    %c0_i32 = arith.constant 0 : i32
    %c0_i32_0 = arith.constant 0 : i32
    %c0_i32_1 = arith.constant 0 : i32
    return %c0_i32, %c0_i32_0 : i32, i32
  }
  func.func @transform_5(%arg0: i32) -> (i32, i32) {
    %c0_i32 = arith.constant 0 : i32
    %c0_i32_0 = arith.constant 0 : i32
    %c0_i32_1 = arith.constant 0 : i32
    return %c0_i32, %c0_i32_0 : i32, i32
  }
  func.func @transform_6(%arg0: i32) -> (i32, i32) {
    %c0_i32 = arith.constant 0 : i32
    %c0_i32_0 = arith.constant 0 : i32
    %c0_i32_1 = arith.constant 0 : i32
    return %c0_i32, %c0_i32_0 : i32, i32
  }
  func.func @transform_7(%arg0: i32) -> (i32, i32) {
    %c0_i32 = arith.constant 0 : i32
    %c0_i32_0 = arith.constant 0 : i32
    %c0_i32_1 = arith.constant 0 : i32
    return %c0_i32, %c0_i32_0 : i32, i32
  }
  func.func @transform_8(%arg0: i32) -> (i32, i32) {
    %c0_i32 = arith.constant 0 : i32
    %c0_i32_0 = arith.constant 0 : i32
    %c0_i32_1 = arith.constant 0 : i32
    return %c0_i32, %c0_i32_0 : i32, i32
  }
  func.func @transform_9(%arg0: i32) -> (i32, i32, i32) {
    %c0_i32 = arith.constant 0 : i32
    %c0_i32_0 = arith.constant 0 : i32
    %c0_i32_1 = arith.constant 0 : i32
    return %arg0, %c0_i32, %c0_i32_0 : i32, i32, i32
  }
}

</mosaic_0001>

<bundles_post_ra>
// kernel: tpu_custom_call.1
= control target key start
LH: loop header
LB: loop body
LE: loop exit
PB: predicated region body
PF: predicated region fallthrough
CT: control target
= control target key end

     0   :  { %14 = vsyncpa [#allocation3], 0  ;;  %s2465_s0 = inlined_call_operand.hbm [shape: f32[2,8,32], index: 0, kind: input, shape index: {}]   ;;  %s2466_s1 = inlined_call_operand.vmem [shape: f32[32,64], index: 1, kind: input, shape index: {}]   ;;  %s2467_s2 = inlined_call_operand.vmem [shape: f32[1,64], index: 2, kind: input, shape index: {}]   ;;  %s2468_s3 = inlined_call_operand.vmem [shape: f32[32,64], index: 3, kind: input, shape index: {}]   ;;  %s2469_s4 = inlined_call_operand.vmem [shape: f32[1,64], index: 4, kind: input, shape index: {}]   ;;  %s2470_s5 = inlined_call_operand.vmem [shape: f32[32,64], index: 5, kind: input, shape index: {}]   ;;  %s2471_s6 = inlined_call_operand.vmem [shape: f32[1,64], index: 6, kind: input, shape index: {}]   ;;  %s2472_s7 = inlined_call_operand.vmem [shape: f32[64,32], index: 7, kind: input, shape index: {}]   ;;  %s2473_s8 = inlined_call_operand.vmem [shape: f32[1,32], index: 8, kind: input, shape index: {}]   ;;  %s2474_s9 = inlined_call_operand.hbm [shape: f32[2,8,32], index: 9, kind: output, shape index: {}]  }
   0x1   :  { %15 = vsyncpa [#allocation4], 0  ;;  %s2135_s30 = smov [#allocation2]   ;;  %s2087_s13 = scalar_lea.hbm %s2465_s0, 256 }
   0x2   :  { %s21_s10 = sshll.u32 %s2135_s30, 4  ;;  %p2088_p0 = scmp.ne.s32.totalorder %s2465_s0, %s2087_s13  ;;  %s22_s10 = int_to_ptr.vmem [resolvable:$true] %s21_s10 }
   0x3   :  { %p2091_p1 = scmp.lt.u32.totalorder %s2087_s13, %s2465_s0 }
   0x5   :  { %p2093_p2 = pnand %p2091_p1, %p2088_p0 }
   0x7   :  { %2096 = shalt.err (!%p2093_p2)
}
   0x8   :  { %s2097_s18 = scalar_lea.vmem %s22_s10, 256  ;;  %p2102_p4 = scmp.lt.s32.totalorder %s22_s10, %s22_s10 }
   0x9   :  { %p2098_p3 = scmp.ne.s32.totalorder %s22_s10, %s2097_s18  ;;  %p2103_p5 = scmp.lt.s32.totalorder %s2097_s18, %s2097_s18 }
   0xb   :  { %p2104_p6 = por %p2103_p5, %p2102_p4 }
   0xd   :  { %p2105_p7 = pnand %p2104_p6, %p2098_p3 }
   0xf   :  { %2108 = shalt.err (!%p2105_p7)
}
  0x10   :  { %s2136_s19 = smov 128   ;;  %s2137_s20 = smov 8  }
  0x11   :  { %27 = dma.hbm_to_vmem [thread:$0]  %s2465_s0, 256, %s22_s10, [#allocation3], %s2136_s19, %s2136_s19, %s2137_s20  }
  0x12   :  { %2131 = dma.done.wait [#allocation3], 256  }
  0x13   :  { %2132 = vsyncadd [#allocation3], 4294967040  ;;  %vm60_vm0 = vcmask 261120   ;;  %v49_v0 = vld [vmem:[%s2466_s1] sm:$0xff]  ;;  %v50_v1 = vld [vmem:[%s2466_s1 + $0x8] sm:$0xff]  ;;  %v2138_v14 = vmov 0.0  }
  0x14   :  { %v51_v2 = vld [vmem:[%s2466_s1 + $0x10] sm:$0xff]  ;;  %v2003_v3 = vpack.c.bf16 %v50_v1, %v49_v0  ;;  %v52_v4 = vld [vmem:[%s2466_s1 + $0x18] sm:$0xff]  ;;  %v47_v5 = vld [vmem:[#allocation2] sm:$0xff]  ;;  %vm2139_vm1 = vmmov 0   ;;  %vm314_vm2 = vcmask 130048   ;;  %s2140_s21 = smov 112  }
  0x15   :  { %v2007_v6 = vpack.c.bf16 %v52_v4, %v51_v2  ;;  %1879 = vmatprep.mubr.msk.f32.mxu1 %vm60_vm0, %v47_v5  ;;  %v142_v7 = vld [vmem:[%s2468_s3] sm:$0xff]  ;;  %v143_v8 = vld [vmem:[%s2468_s3 + $0x8] sm:$0xff]  ;;  %1901 = vmatprep.mubr.msk.f32.mxu0 %vm60_vm0, %v47_v5  ;;  %v144_v10 = vld [vmem:[%s2468_s3 + $0x10] sm:$0xff]  ;;  %vm467_vm3 = vcmask 64512   ;;  %s2142_s29 = smov 80   ;;  %s2143_s30 = smov 16  }
  0x16   :  { %2004 = vmatprep.subr.bf16.mxu1 %v2003_v3  ;;  %v2011_v9 = vpack.c.bf16 %v143_v8, %v142_v7  ;;  %v145_v11 = vld [vmem:[%s2468_s3 + $0x18] sm:$0xff]  ;;  %v48_v12 = vld [vmem:[#allocation2 + $0x8] sm:$0xff]  ;;  %v1778_v17 = vld [vmem:[%s2469_s4] ss:$0 sm:$0xff]  ;;  %s2144_s0 = smov 32   ;;  %s2145_s24 = smov 48  }
  0x17   :  { %2006 = vmatpush3.bf16.msra.mxu1 %v2003_v3  ;;  %v2015_v13 = vpack.c.bf16 %v145_v11, %v144_v10  ;;  %v1775_v21 = vld [vmem:[%s2467_s2] ss:$0 sm:$0xff]  ;;  %v229_v26 = vld [vmem:[%s2470_s5 + $0x8] sm:$0xff]  ;;  %v230_v27 = vld [vmem:[%s2470_s5 + $0x10] sm:$0xff]  ;;  %vm1656_vm4 = vcmask 392192   ;;  %vm1674_vm5 = vcmask 523264  }
  0x18   :  { %2008 = vmatprep.subr.bf16.mxu1 %v2007_v6  ;;  %v228_v25 = vld [vmem:[%s2470_s5] sm:$0xff]  ;;  %v231_v29 = vld [vmem:[%s2470_s5 + $0x18] sm:$0xff]  ;;  %s2146_s26 = smov [#allocation5]  }
  0x19   :  { %v2019_v28 = vpack.c.bf16 %v229_v26, %v228_v25  ;;  %v2023_v30 = vpack.c.bf16 %v231_v29, %v230_v27  ;;  %v1781_v48 = vld [vmem:[%s2471_s6] ss:$0 sm:$0xff]  ;;  %s2141_s6 = smov 96   ;;  %s1763_s27 = sshll.u32 %s2146_s26, 4  ;;  %s1764_s27 = int_to_ptr.vmem [resolvable:$true] %s1763_s27 }
  0x1a   :  { %s2109_s5 = scalar_lea.vmem %s1764_s27, 256  ;;  %p2114_p9 = scmp.lt.s32.totalorder %s1764_s27, %s1764_s27 }
  0x1b   :  { %2010 = vmatpush3.bf16.msra.mxu1 %v2007_v6  ;;  %2020 = vmatprep.subr.bf16.mxu0 %v2019_v28  ;;  %p2110_p8 = scmp.ne.s32.totalorder %s1764_s27, %s2109_s5  ;;  %p2115_p10 = scmp.lt.s32.totalorder %s2109_s5, %s2109_s5 }
  0x1c   :  { %2012 = vmatprep.subr.bf16.mxu1 %v2011_v9  ;;  %2022 = vmatpush3.bf16.msra.mxu0 %v2019_v28 }
  0x1d   :  { %2024 = vmatprep.subr.bf16.mxu0 %v2023_v30  ;;  %p2116_p11 = por %p2115_p10, %p2114_p9 }
  0x1e   :  { %1880 = vmatmul.mubr.msk.f32.vlgmr.msra.gmra.mrb[0].mxu1 %vm60_vm0, %v48_v12 }
  0x1f   :  { %2014 = vmatpush3.bf16.msra.mxu1 %v2011_v9  ;;  %1890 = vmatprep.mubr.msk.f32.mxu1 %vm60_vm0, %v47_v5  ;;  %p2117_p12 = pnand %p2116_p11, %p2110_p8 }
  0x20   :  { %2016 = vmatprep.subr.bf16.mxu1 %v2015_v13  ;;  %2026 = vmatpush3.bf16.msra.mxu0 %v2023_v30 }
  0x21   :  { %1914 = vmatprep.subr.mxu0 %v2138_v14 }
  0x23   :  { %2018 = vmatpush3.bf16.msra.mxu1 %v2015_v13  ;;  %1902 = vmatmul.mubr.msk.f32.vlgmr.msra.gmra.mrb[0].mxu0 %vm60_vm0, %v48_v12 }
  0x24   :  { %1904 = vmatprep.subr.mxu1 %v2138_v14  ;;  %1916 = vmatprep.mubr.msk.f32.mxu0 %vm2139_vm1, %v2138_v14 }
  0x26   :  { %1891 = vmatmul.mubr.msk.f32.vlgmr.msra.gmra.mrb[2].mxu1 %vm60_vm0, %v48_v12 }
  0x27   :  { %1906 = vmatprep.mubr.msk.f32.mxu1 %vm2139_vm1, %v2138_v14 }
  0xf1   :  { %v1881_v15 = vpop.f32.mrb[0].mxu1 }
  0xf2   :  { %v133_v16 = vpop.f32.mrb[1].mxu1  ;;  %v2269_v24 = vadd.f32 %v1881_v15, %v1775_v21 }
  0xf3   :  { %v2258_v23 = vadd.f32 %v1775_v21, %v133_v16 }
  0xf6   :  { %v1903_v47 = vpop.f32.mrb[0].mxu0 }
  0xf7   :  { %v305_v49 = vpop.f32.mrb[1].mxu0  ;;  %v2301_v50 = vadd.f32 %v1903_v47, %v1781_v48 }
  0xf8   :  { %v2303_v51 = vadd.f32 %v1781_v48, %v305_v49 }
  0xf9   :  { %v1892_v18 = vpop.f32.mrb[2].mxu1 }
  0xfa   :  { %v2247_v19 = vadd.f32 %v1892_v18, %v1778_v17  ;;  %v219_v20 = vpop.f32.mrb[3].mxu1  ;;  %1915 = vmatpush3.msra.mxu0 %v2303_v51 }
  0xfb   :  { %v2252_v22 = vadd.f32 %v1778_v17, %v219_v20  ;;  %1924 = vmatprep.subr.mxu0 %v2138_v14 }
  0xfc   :  { %716 = vrot.lane.b32.xlu1 %v2247_v19, %s2140_s21 }
  0xfd   :  { %1905 = vmatpush3.xpose.msk.msra.mxu1 %vm314_vm2, %v2252_v22 }
  0xfe   :  { %1909 = vmatprep.subr.mxu1 %v2138_v14 }
 0x100   :  { %636 = vrot.lane.b32.xlu1 %v2258_v23, %s2140_s21  ;;  %1907 = vmatmul.mubr.msk.f32.vlgmr.msra.gmra.mrb[4].mxu1 %vm314_vm2, %v2258_v23 }
 0x101   :  { %1910 = vmatpush3.xpose.msk.msra.mxu1 %vm314_vm2, %v2247_v19  ;;  %1911 = vmatprep.mubr.msk.f32.mxu1 %vm2139_vm1, %v2138_v14 }
 0x102   :  { %1919 = vmatprep.subr.mxu1 %v2138_v14 }
 0x104   :  { %1912 = vmatmul.mubr.msk.f32.vlgmr.msra.gmra.mrb[6].mxu1 %vm314_vm2, %v2269_v24 }
 0x105   :  { %1921 = vmatprep.mubr.msk.f32.mxu1 %vm2139_vm1, %v2138_v14  ;;  %1920 = vmatpush3.msra.mxu1 %v2301_v50 }
 0x106   :  { %1929 = vmatprep.subr.mxu1 %v2138_v14 }
 0x16e   :  { %v717_v52 = vpop.permute.xlu1 %716 }
 0x172   :  { %v637_v53 = vpop.permute.xlu1 %636 }
 0x1d3   :  { %v387_v31 = vpop.f32.mrb[4].mxu1 }
 0x1d4   :  { %v1908_v32 = vpop.f32.mrb[5].mxu1  ;;  %v468_v33 = vsel %vm467_vm3, %v387_v31, -inf }
 0x1d5   :  { %469 = vmax.xlane.f32.xlu0 %v468_v33 }
 0x1d7   :  { %v463_v34 = vpop.f32.mrb[6].mxu1 }
 0x1d8   :  { %v1913_v35 = vpop.f32.mrb[7].mxu1  ;;  %v471_v36 = vsel %vm467_vm3, %v463_v34, -inf }
 0x1d9   :  { %472 = vmax.xlane.f32.xlu0 %v471_v36 }
 0x1ef   :  { %638 = vrot.lane.b32.xlu0 %v2252_v22, %s2140_s21 }
 0x262   :  { %v470_v37 = vpop.xlane.xlu0 %469 }
 0x263   :  { %v474_v38 = vsub.f32 %v387_v31, %v470_v37 }
 0x265   :  { %v476_v39 = vmul.f32 1.442695, %v474_v38 }
 0x266   :  { %v473_v40 = vpop.xlane.xlu0 %472 }
 0x267   :  { %2055 = vpow2.f32 %v476_v39  ;;  %v475_v41 = vsub.f32 %v463_v34, %v473_v40 }
 0x269   :  { %v478_v42 = vmul.f32 1.442695, %v475_v41 }
 0x26a   :  { %v639_v58 = vpop.permute.xlu0 %638 }
 0x26b   :  { %2057 = vpow2.f32 %v478_v42 }
 0x271   :  { %v2056_v43 = vpop.eup %2055 }
 0x272   :  { %v480_v44 = vsel %vm467_vm3, %v2056_v43, 0.0 }
 0x273   :  { %481 = vadd.xlane.f32.xlu1 %v480_v44 }
 0x275   :  { %v2058_v45 = vpop.eup %2057 }
 0x276   :  { %v483_v46 = vsel %vm467_vm3, %v2058_v45, 0.0 }
 0x277   :  { %484 = vadd.xlane.f32.xlu1 %v483_v46 }
 0x288   :  { %714 = vrot.lane.b32.xlu1 %v2269_v24, %s2140_s21 }
 0x300   :  { %v482_v54 = vpop.xlane.xlu1 %481 }
 0x301   :  { %2059 = vrcp.f32 %v482_v54 }
 0x304   :  { %v485_v55 = vpop.xlane.xlu1 %484 }
 0x305   :  { %2061 = vrcp.f32 %v485_v55 }
 0x308   :  { %v715_v61 = vpop.permute.xlu1 %714 }
 0x30b   :  { %v2060_v56 = vpop.eup %2059 }
 0x30c   :  { %v488_v57 = vmul.f32 %v2060_v56, %v2056_v43 }
 0x30e   :  { %1917 = vmatmul.mubr.msk.f32.vlgmr.msra.gmra.mrb[2].mxu0 %vm467_vm3, %v488_v57 }
 0x30f   :  { %v2062_v59 = vpop.eup %2061  ;;  %1925 = vmatpush3.xpose.msk.msra.mxu0 %vm314_vm2, %v639_v58  ;;  %1926 = vmatprep.mubr.msk.f32.mxu0 %vm2139_vm1, %v2138_v14 }
 0x310   :  { %v489_v60 = vmul.f32 %v2062_v59, %v2058_v45  ;;  %1934 = vmatprep.subr.mxu0 %v2138_v14 }
 0x312   :  { %1922 = vmatmul.mubr.msk.f32.vlgmr.msra.gmra.mrb[8].mxu1 %vm467_vm3, %v489_v60  ;;  %1927 = vmatmul.mubr.msk.f32.vlgmr.msra.gmra.mrb[4].mxu0 %vm314_vm2, %v637_v53 }
 0x313   :  { %1930 = vmatpush3.xpose.msk.msra.mxu1 %vm314_vm2, %v717_v52  ;;  %1931 = vmatprep.mubr.msk.f32.mxu1 %vm2139_vm1, %v2138_v14 }
 0x314   :  { %1939 = vmatprep.subr.mxu1 %v2138_v14  ;;  %1936 = vmatprep.mubr.msk.f32.mxu0 %vm2139_vm1, %v2138_v14 }
 0x316   :  { %1932 = vmatmul.mubr.msk.f32.vlgmr.msra.gmra.mrb[10].mxu1 %vm314_vm2, %v715_v61 }
 0x317   :  { %1941 = vmatprep.mubr.msk.f32.mxu1 %vm2139_vm1, %v2138_v14 }
 0x3e1   :  { %v2327_v62 = vpop.f32.mrb[2].mxu0 }
 0x3e2   :  { %v1918_v63 = vpop.f32.mrb[3].mxu0 }
 0x3e5   :  { %v2329_v0 = vpop.f32.mrb[8].mxu1  ;;  %v710_v1 = vpop.f32.mrb[4].mxu0 }
 0x3e6   :  { %v1923_v2 = vpop.f32.mrb[9].mxu1  ;;  %v1928_v3 = vpop.f32.mrb[5].mxu0  ;;  %v792_v4 = vsel %vm467_vm3, %v710_v1, -inf }
 0x3e7   :  { %793 = vmax.xlane.f32.xlu0 %v792_v4 }
 0x3e9   :  { %v788_v5 = vpop.f32.mrb[10].mxu1 }
 0x3ea   :  { %v1933_v6 = vpop.f32.mrb[11].mxu1  ;;  %v795_v7 = vsel %vm467_vm3, %v788_v5, -inf }
 0x3eb   :  { %796 = vmax.xlane.f32.xlu1 %v795_v7 }
 0x3fc   :  { %892 = vrot.lane.b32.xlu1 %v2301_v50, %s2140_s21 }
 0x3fd   :  { %815 = vrot.lane.b32.xlu0 %v2303_v51, %s2140_s21 }
 0x400   :  { %970 = vrot.lane.b32.xlu1 %v2252_v22, %s2141_s6 }
 0x404   :  { %1048 = vrot.lane.b32.xlu1 %v2247_v19, %s2141_s6 }
 0x408   :  { %1046 = vrot.lane.b32.xlu1 %v2269_v24, %s2141_s6 }
 0x474   :  { %v794_v8 = vpop.xlane.xlu0 %793 }
 0x475   :  { %v798_v9 = vsub.f32 %v710_v1, %v794_v8 }
 0x477   :  { %v800_v10 = vmul.f32 1.442695, %v798_v9 }
 0x478   :  { %v816_v11 = vpop.permute.xlu0 %815  ;;  %v797_v12 = vpop.xlane.xlu1 %796 }
 0x479   :  { %2063 = vpow2.f32 %v800_v10  ;;  %v799_v13 = vsub.f32 %v788_v5, %v797_v12  ;;  %1935 = vmatpush3.msra.mxu0 %v816_v11 }
 0x47a   :  { %1944 = vmatprep.subr.mxu0 %v2138_v14 }
 0x47b   :  { %v802_v15 = vmul.f32 1.442695, %v799_v13 }
 0x47c   :  { %v893_v16 = vpop.permute.xlu1 %892 }
 0x47d   :  { %2065 = vpow2.f32 %v802_v15  ;;  %1940 = vmatpush3.msra.mxu1 %v893_v16 }
 0x47e   :  { %1949 = vmatprep.subr.mxu1 %v2138_v14 }
 0x480   :  { %v971_v27 = vpop.permute.xlu1 %970 }
 0x483   :  { %v2064_v17 = vpop.eup %2063 }
 0x484   :  { %v804_v18 = vsel %vm467_vm3, %v2064_v17, 0.0  ;;  %v1049_v31 = vpop.permute.xlu1 %1048 }
 0x485   :  { %805 = vadd.xlane.f32.xlu0 %v804_v18 }
 0x487   :  { %v2066_v20 = vpop.eup %2065 }
 0x488   :  { %v807_v21 = vsel %vm467_vm3, %v2066_v20, 0.0  ;;  %v1047_v34 = vpop.permute.xlu1 %1046 }
 0x489   :  { %808 = vadd.xlane.f32.xlu0 %v807_v21 }
 0x49f   :  { %968 = vrot.lane.b32.xlu0 %v2258_v23, %s2141_s6 }
 0x512   :  { %v806_v25 = vpop.xlane.xlu0 %805 }
 0x513   :  { %2067 = vrcp.f32 %v806_v25 }
 0x516   :  { %v809_v26 = vpop.xlane.xlu0 %808 }
 0x517   :  { %2069 = vrcp.f32 %v809_v26 }
 0x51a   :  { %v969_v33 = vpop.permute.xlu0 %968 }
 0x51d   :  { %v2068_v28 = vpop.eup %2067 }
 0x51e   :  { %v812_v29 = vmul.f32 %v2068_v28, %v2064_v17 }
 0x520   :  { %1937 = vmatmul.mubr.msk.f32.vlgmr.msra.gmra.mrb[6].mxu0 %vm467_vm3, %v812_v29 }
 0x521   :  { %v2070_v30 = vpop.eup %2069  ;;  %1945 = vmatpush3.xpose.msk.msra.mxu0 %vm314_vm2, %v971_v27  ;;  %1946 = vmatprep.mubr.msk.f32.mxu0 %vm2139_vm1, %v2138_v14 }
 0x522   :  { %v813_v32 = vmul.f32 %v2070_v30, %v2066_v20  ;;  %1954 = vmatprep.subr.mxu0 %v2138_v14 }
 0x524   :  { %1942 = vmatmul.mubr.msk.f32.vlgmr.msra.gmra.mrb[12].mxu1 %vm467_vm3, %v813_v32  ;;  %1947 = vmatmul.mubr.msk.f32.vlgmr.msra.gmra.mrb[8].mxu0 %vm314_vm2, %v969_v33 }
 0x525   :  { %1950 = vmatpush3.xpose.msk.msra.mxu1 %vm314_vm2, %v1049_v31  ;;  %1951 = vmatprep.mubr.msk.f32.mxu1 %vm2139_vm1, %v2138_v14 }
 0x526   :  { %1959 = vmatprep.subr.mxu1 %v2138_v14  ;;  %1956 = vmatprep.mubr.msk.f32.mxu0 %vm2139_vm1, %v2138_v14 }
 0x528   :  { %1952 = vmatmul.mubr.msk.f32.vlgmr.msra.gmra.mrb[14].mxu1 %vm314_vm2, %v1047_v34  ;;  %v1659_v34 = vld [vmem:[%s2472_s7] sm:$0xff] }
 0x529   :  { %1961 = vmatprep.mubr.msk.f32.mxu1 %vm2139_vm1, %v2138_v14 }
 0x5f3   :  { %v2365_v35 = vpop.f32.mrb[6].mxu0 }
 0x5f4   :  { %v1938_v36 = vpop.f32.mrb[7].mxu0 }
 0x5f7   :  { %v2367_v37 = vpop.f32.mrb[12].mxu1  ;;  %v1042_v38 = vpop.f32.mrb[8].mxu0 }
 0x5f8   :  { %v1943_v39 = vpop.f32.mrb[13].mxu1  ;;  %v1948_v40 = vpop.f32.mrb[9].mxu0  ;;  %v1124_v41 = vsel %vm467_vm3, %v1042_v38, -inf }
 0x5f9   :  { %1125 = vmax.xlane.f32.xlu0 %v1124_v41  ;;  %v1663_v39 = vld [vmem:[%s2472_s7 + $0x20] sm:$0xff]  ;;  %v1664_v40 = vld [vmem:[%s2472_s7 + $0x28] sm:$0xff] }
 0x5fa   :  { %v2035_v41 = vpack.c.bf16 %v1664_v40, %v1663_v39 }
 0x5fb   :  { %v1120_v42 = vpop.f32.mrb[14].mxu1 }
 0x5fc   :  { %v1953_v43 = vpop.f32.mrb[15].mxu1  ;;  %v1127_v44 = vsel %vm467_vm3, %v1120_v42, -inf }
 0x5fd   :  { %1128 = vmax.xlane.f32.xlu1 %v1127_v44  ;;  %v1666_v43 = vld [vmem:[%s2472_s7 + $0x38] sm:$0xff] }
 0x60e   :  { %1222 = vrot.lane.b32.xlu1 %v2301_v50, %s2141_s6 }
 0x60f   :  { %1146 = vrot.lane.b32.xlu0 %v2303_v51, %s2141_s6 }
 0x612   :  { %1300 = vrot.lane.b32.xlu1 %v2252_v22, %s2142_s29 }
 0x616   :  { %1378 = vrot.lane.b32.xlu1 %v2247_v19, %s2142_s29 }
 0x61a   :  { %1376 = vrot.lane.b32.xlu1 %v2269_v24, %s2142_s29 }
 0x686   :  { %v1126_v45 = vpop.xlane.xlu0 %1125 }
 0x687   :  { %v1130_v46 = vsub.f32 %v1042_v38, %v1126_v45 }
 0x689   :  { %v1132_v47 = vmul.f32 1.442695, %v1130_v46 }
 0x68a   :  { %v1147_v48 = vpop.permute.xlu0 %1146  ;;  %v1129_v49 = vpop.xlane.xlu1 %1128 }
 0x68b   :  { %2071 = vpow2.f32 %v1132_v47  ;;  %v1131_v52 = vsub.f32 %v1120_v42, %v1129_v49  ;;  %1955 = vmatpush3.msra.mxu0 %v1147_v48  ;;  %v1665_v42 = vld [vmem:[%s2472_s7 + $0x30] sm:$0xff] }
 0x68c   :  { %1964 = vmatprep.subr.mxu0 %v2138_v14  ;;  %v2039_v44 = vpack.c.bf16 %v1666_v43, %v1665_v42 }
 0x68d   :  { %v1134_v53 = vmul.f32 1.442695, %v1131_v52 }
 0x68e   :  { %v1223_v54 = vpop.permute.xlu1 %1222 }
 0x68f   :  { %2073 = vpow2.f32 %v1134_v53  ;;  %1960 = vmatpush3.msra.mxu1 %v1223_v54 }
 0x690   :  { %1969 = vmatprep.subr.mxu1 %v2138_v14 }
 0x692   :  { %v1301_v58 = vpop.permute.xlu1 %1300 }
 0x695   :  { %v2072_v19 = vpop.eup %2071 }
 0x696   :  { %v1136_v22 = vsel %vm467_vm3, %v2072_v19, 0.0  ;;  %v1379_v63 = vpop.permute.xlu1 %1378 }
 0x697   :  { %1137 = vadd.xlane.f32.xlu0 %v1136_v22 }
 0x699   :  { %v2074_v24 = vpop.eup %2073 }
 0x69a   :  { %v1139_v55 = vsel %vm467_vm3, %v2074_v24, 0.0  ;;  %v1377_v2 = vpop.permute.xlu1 %1376 }
 0x69b   :  { %1140 = vadd.xlane.f32.xlu0 %v1139_v55 }
 0x6b1   :  { %1298 = vrot.lane.b32.xlu0 %v2258_v23, %s2142_s29 }
 0x724   :  { %v1138_v56 = vpop.xlane.xlu0 %1137 }
 0x725   :  { %2075 = vrcp.f32 %v1138_v56 }
 0x728   :  { %v1141_v57 = vpop.xlane.xlu0 %1140 }
 0x729   :  { %2077 = vrcp.f32 %v1141_v57 }
 0x72c   :  { %v1299_v23 = vpop.permute.xlu0 %1298 }
 0x72f   :  { %v2076_v59 = vpop.eup %2075 }
 0x730   :  { %v1144_v60 = vmul.f32 %v2076_v59, %v2072_v19 }
 0x732   :  { %1957 = vmatmul.mubr.msk.f32.vlgmr.msra.gmra.mrb[10].mxu0 %vm467_vm3, %v1144_v60  ;;  %v1808_v60 = vld [vmem:[%s2473_s8] ss:$0 sm:$0xff] }
 0x733   :  { %v2078_v61 = vpop.eup %2077  ;;  %1965 = vmatpush3.xpose.msk.msra.mxu0 %vm314_vm2, %v1301_v58  ;;  %1966 = vmatprep.mubr.msk.f32.mxu0 %vm2139_vm1, %v2138_v14 }
 0x734   :  { %v1145_v1 = vmul.f32 %v2078_v61, %v2074_v24  ;;  %1974 = vmatprep.subr.mxu0 %v2138_v14 }
 0x736   :  { %1962 = vmatmul.mubr.msk.f32.vlgmr.msra.gmra.mrb[16].mxu1 %vm467_vm3, %v1145_v1  ;;  %1967 = vmatmul.mubr.msk.f32.vlgmr.msra.gmra.mrb[12].mxu0 %vm314_vm2, %v1299_v23 }
 0x737   :  { %1970 = vmatpush3.xpose.msk.msra.mxu1 %vm314_vm2, %v1379_v63  ;;  %1971 = vmatprep.mubr.msk.f32.mxu1 %vm2139_vm1, %v2138_v14 }
 0x738   :  { %1979 = vmatprep.subr.mxu1 %v2138_v14  ;;  %1976 = vmatprep.mubr.msk.f32.mxu0 %vm2139_vm1, %v2138_v14 }
 0x73a   :  { %1972 = vmatmul.mubr.msk.f32.vlgmr.msra.gmra.mrb[18].mxu1 %vm314_vm2, %v1377_v2 }
 0x73b   :  { %1981 = vmatprep.mubr.msk.f32.mxu1 %vm2139_vm1, %v2138_v14 }
 0x805   :  { %v1218_v3 = vpop.f32.mrb[10].mxu0 }
 0x806   :  { %v1958_v4 = vpop.f32.mrb[11].mxu0 }
 0x809   :  { %v1294_v5 = vpop.f32.mrb[16].mxu1  ;;  %v1372_v6 = vpop.f32.mrb[12].mxu0 }
 0x80a   :  { %v1963_v7 = vpop.f32.mrb[17].mxu1  ;;  %v1968_v8 = vpop.f32.mrb[13].mxu0  ;;  %v1454_v9 = vsel %vm467_vm3, %v1372_v6, -inf }
 0x80b   :  { %1455 = vmax.xlane.f32.xlu0 %v1454_v9 }
 0x80d   :  { %v1450_v10 = vpop.f32.mrb[18].mxu1 }
 0x80e   :  { %v1973_v11 = vpop.f32.mrb[19].mxu1  ;;  %v1457_v12 = vsel %vm467_vm3, %v1450_v10, -inf }
 0x80f   :  { %1458 = vmax.xlane.f32.xlu1 %v1457_v12 }
 0x820   :  { %1552 = vrot.lane.b32.xlu1 %v2301_v50, %s2142_s29 }
 0x824   :  { %1630 = vrot.lane.b32.xlu1 %v2365_v35, %s2143_s30  ;;  %v1661_v35 = vld [vmem:[%s2472_s7 + $0x10] sm:$0xff] }
 0x828   :  { %1632 = vrot.lane.b32.xlu1 %v2367_v37, %s2143_s30  ;;  %v1662_v37 = vld [vmem:[%s2472_s7 + $0x18] sm:$0xff] }
 0x829   :  { %v2031_v38 = vpack.c.bf16 %v1662_v37, %v1661_v35 }
 0x82c   :  { %1640 = vrot.lane.b32.xlu1 %v1294_v5, %s2144_s0 }
 0x898   :  { %v1456_v14 = vpop.xlane.xlu0 %1455 }
 0x899   :  { %v1460_v13 = vsub.f32 %v1372_v6, %v1456_v14 }
 0x89b   :  { %v1462_v15 = vmul.f32 1.442695, %v1460_v13 }
 0x89c   :  { %v1459_v16 = vpop.xlane.xlu1 %1458 }
 0x89d   :  { %2079 = vpow2.f32 %v1462_v15  ;;  %v1461_v17 = vsub.f32 %v1450_v10, %v1459_v16 }
 0x89f   :  { %v1464_v18 = vmul.f32 1.442695, %v1461_v17 }
 0x8a0   :  { %v1553_v20 = vpop.permute.xlu1 %1552 }
 0x8a1   :  { %2081 = vpow2.f32 %v1464_v18  ;;  %1980 = vmatpush3.msra.mxu1 %v1553_v20 }
 0x8a4   :  { %v1631_v49 = vpop.permute.xlu1 %1630 }
 0x8a5   :  { %v1652_v54 = vsel %vm314_vm2, %v2327_v62, %v1631_v49 }
 0x8a7   :  { %v2080_v21 = vpop.eup %2079 }
 0x8a8   :  { %v1466_v50 = vsel %vm467_vm3, %v2080_v21, 0.0  ;;  %v1633_v52 = vpop.permute.xlu1 %1632 }
 0x8a9   :  { %1467 = vadd.xlane.f32.xlu0 %v1466_v50  ;;  %v1653_v56 = vsel %vm314_vm2, %v2329_v0, %v1633_v52 }
 0x8ab   :  { %v2082_v25 = vpop.eup %2081 }
 0x8ac   :  { %v1469_v26 = vsel %vm467_vm3, %v2082_v25, 0.0  ;;  %v1641_v19 = vpop.permute.xlu1 %1640 }
 0x8ad   :  { %1470 = vadd.xlane.f32.xlu0 %v1469_v26  ;;  %v1655_v57 = vsel %vm60_vm0, %v1653_v56, %v1641_v19 }
 0x8c3   :  { %1476 = vrot.lane.b32.xlu0 %v2303_v51, %s2142_s29  ;;  %v1660_v51 = vld [vmem:[%s2472_s7 + $0x8] sm:$0xff] }
 0x8c4   :  { %v2027_v36 = vpack.c.bf16 %v1660_v51, %v1659_v34 }
 0x8c7   :  { %1638 = vrot.lane.b32.xlu0 %v1218_v3, %s2144_s0 }
 0x936   :  { %v1468_v27 = vpop.xlane.xlu0 %1467 }
 0x937   :  { %2083 = vrcp.f32 %v1468_v27 }
 0x93a   :  { %v1471_v28 = vpop.xlane.xlu0 %1470 }
 0x93b   :  { %2085 = vrcp.f32 %v1471_v28 }
 0x93e   :  { %v1477_v29 = vpop.permute.xlu0 %1476 }
 0x93f   :  { %1975 = vmatpush3.msra.mxu0 %v1477_v29 }
 0x940   :  { %2028 = vmatprep.subr.bf16.mxu0 %v2027_v36 }
 0x941   :  { %v2084_v30 = vpop.eup %2083 }
 0x942   :  { %v1474_v31 = vmul.f32 %v2084_v30, %v2080_v21  ;;  %v1639_v53 = vpop.permute.xlu0 %1638 }
 0x943   :  { %v1654_v22 = vsel %vm60_vm0, %v1652_v54, %v1639_v53 }
 0x944   :  { %1977 = vmatmul.mubr.msk.f32.vlgmr.msra.gmra.mrb[14].mxu0 %vm467_vm3, %v1474_v31 }
 0x945   :  { %v2086_v32 = vpop.eup %2085  ;;  %2030 = vmatpush3.bf16.msra.mxu0 %v2027_v36 }
 0x946   :  { %v1475_v33 = vmul.f32 %v2086_v32, %v2082_v25  ;;  %2032 = vmatprep.subr.bf16.mxu0 %v2031_v38 }
 0x948   :  { %1982 = vmatmul.mubr.msk.f32.vlgmr.msra.gmra.mrb[20].mxu1 %vm467_vm3, %v1475_v33 }
 0x949   :  { %2034 = vmatpush3.bf16.msra.mxu0 %v2031_v38 }
 0x94a   :  { %2036 = vmatprep.subr.bf16.mxu0 %v2035_v41 }
 0x94d   :  { %2038 = vmatpush3.bf16.msra.mxu0 %v2035_v41 }
 0x94e   :  { %2040 = vmatprep.subr.bf16.mxu0 %v2039_v44 }
 0x951   :  { %2042 = vmatpush3.bf16.msra.mxu0 %v2039_v44 }
 0xa17   :  { %v1548_v45 = vpop.f32.mrb[14].mxu0 }
 0xa18   :  { %1646 = vrot.lane.b32.xlu0 %v1548_v45, %s2145_s24  ;;  %v1978_v46 = vpop.f32.mrb[15].mxu0 }
 0xa1b   :  { %v1624_v47 = vpop.f32.mrb[20].mxu1 }
 0xa1c   :  { %1648 = vrot.lane.b32.xlu1 %v1624_v47, %s2145_s24  ;;  %v1983_v48 = vpop.f32.mrb[21].mxu1 }
 0xa8a   :  { %v1647_v24 = vpop.permute.xlu0 %1646 }
 0xa8b   :  { %v1657_v55 = vsel %vm1656_vm4, %v1654_v22, %v1647_v24 }
 0xa8c   :  { %2000 = vmatprep.mubr.msk.f32.mxu0 %vm1674_vm5, %v1657_v55 }
 0xa8e   :  { %v1649_v58 = vpop.permute.xlu1 %1648 }
 0xa8f   :  { %v1658_v59 = vsel %vm1656_vm4, %v1655_v57, %v1649_v58 }
 0xa90   :  { %2001 = vmatmul.mubr.msk.f32.vlgmr.msra.gmra.mrb[16].mxu0 %vm1674_vm5, %v1658_v59 }
 0xb63   :  { %v2002_v62 = vpop.f32.mrb[16].mxu0 }
 0xb64   :  { %v1753_v61 = vadd.f32 %v2002_v62, %v1808_v60  ;;  %v1747_v63 = vpop.f32.mrb[17].mxu0 }
 0xb65   :  { %v1748_v1 = vadd.f32 %v1808_v60, %v1747_v63 }
 0xb66   :  { %1757 = vst.msk [vmem:[#allocation5 + $0x8] sm:$0xff] %vm60_vm0, %v1753_v61 }
 0xb67   :  { %1756 = vst.msk [vmem:[#allocation5] sm:$0xff] %vm60_vm0, %v1748_v1 }
 0xb68   :  { %2120 = shalt.err (!%p2117_p12)
}
 0xb69   :  { %s2121_s6 = scalar_lea.hbm %s2474_s9, 256 }
 0xb6a   :  { %p2122_p13 = scmp.ne.s32.totalorder %s2474_s9, %s2121_s6  ;;  %p2125_p0 = scmp.lt.u32.totalorder %s2121_s6, %s2474_s9 }
 0xb6c   :  { %p2127_p1 = pnand %p2125_p0, %p2122_p13 }
 0xb6e   :  { %2130 = shalt.err (!%p2127_p1)
}
 0xb6f   :  { %1769 = dma.vmem_to_hbm [thread:$0]  %s1764_s27, 256, %s2474_s9, [#allocation4], %s2136_s19, %s2136_s19, %s2137_s20  }
 0xb70   :  { %2133 = dma.done.wait [#allocation4], 256  }
 0xb71   :  { %2134 = vsyncadd [#allocation4], 4294967040 }
 0xb72   :  { %1773 = vsyncpa [#allocation3], 1 }
 0xb73   :  { %1774 = vsyncpa [#allocation4], 1 }

</bundles_post_ra>
